<compile_context>
chip_gen: v6e
topology: v6e:2x2x1
jax: 0.10.0
libtpu: 0.0.40
codegen_flags: <defaults>
</compile_context>

<pallas_src>
import jax
import jax.numpy as jnp
from jax.experimental import pallas as pl
from jax.experimental.pallas import tpu as pltpu


def _round_up(v, m):
    return ((v + m - 1) // m) * m


def _linear_kernel_fast(x_ref, w_ref, b_ref, o_ref):
    # x_ref: (TM, dim); w_ref: (dim, n_pad) resident; b_ref: (1, n_pad);
    # o_ref: (TM, n_pad).  Single reduction step -> no accumulator needed.
    o_ref[...] = (
        jnp.dot(x_ref[...], w_ref[...], preferred_element_type=jnp.float32)
        + b_ref[...]
    ).astype(o_ref.dtype)


def _linear_kernel_acc(x_ref, w_ref, b_ref, o_ref, acc_ref):
    # Fallback path: reduction tiled over K with an f32 VMEM accumulator.
    k = pl.program_id(1)

    @pl.when(k == 0)
    def _():
        acc_ref[...] = jnp.zeros_like(acc_ref)

    acc_ref[...] += jnp.dot(x_ref[...], w_ref[...],
                            preferred_element_type=jnp.float32)

    @pl.when(k == pl.num_programs(1) - 1)
    def _():
        o_ref[...] = (acc_ref[...] + b_ref[...]).astype(o_ref.dtype)


# Tile-selection VMEM budget (bytes) - conservative across v5e/v6e/v7x
# (v7x has 64 MiB physical per TensorCore); the actual vmem_limit_bytes passed
# to the compiler is derived from the computed tile footprint below.
_VMEM_BUDGET = 40 * 1024 * 1024
_VMEM_LIMIT_CAP = 56 * 1024 * 1024


def classifier_forward(x, weight, bias):
    """Forward of nn.Linear(dim, n_way): y = x @ W^T + b.

    x: (N, dim); weight: (n_way, dim) (PyTorch layout); bias: (n_way,).
    Returns (N, n_way) in x.dtype.
    """
    N, dim = x.shape
    n_way = weight.shape[0]
    out_dtype = x.dtype
    esz = jnp.dtype(out_dtype).itemsize

    # Lane-dense class dim: pad n_way up to a multiple of 128 (tiny, one-time).
    n_pad = _round_up(n_way, 128)

    # One-time layout plumbing on the (small) parameter: (n_way, dim) -> (dim, n_pad)
    # so the rhs block is K-major and the MXU consumes it without a per-step
    # in-kernel transpose (relevant mostly on v5e's XLU).
    w_t = jnp.transpose(weight).astype(out_dtype)
    if n_pad != n_way:
        w_t = jnp.pad(w_t, ((0, 0), (0, n_pad - n_way)))
        bias = jnp.pad(bias, (0, n_pad - n_way))
    b2 = bias.reshape(1, n_pad).astype(out_dtype)

    cost = pl.CostEstimate(
        flops=2 * N * dim * n_way,
        transcendentals=0,
        bytes_accessed=esz * (N * dim + n_way * dim + N * n_way))

    # Prefer keeping the whole weight VMEM-resident (single reduction step).
    # Count it double-buffered to stay conservative.
    w_bytes = 2 * dim * n_pad * esz
    fast_path = w_bytes <= _VMEM_BUDGET // 2

    if fast_path:
        # ---------- Fast path: TK = dim, no accumulator, no padding of x ----------
        budget_left = _VMEM_BUDGET - w_bytes
        tm = 8
        for cand in (1024, 512, 256, 128, 64, 32, 16, 8):
            if 2 * cand * (dim + n_pad) * esz <= budget_left:
                tm = cand
                break
        if N <= tm:
            if N >= 16:
                # Guarantee >= 2 row tiles so both v7x TensorCores get work.
                tm = _round_up(pl.cdiv(N, 2), 8)
            else:
                tm = N  # block == full row extent (toy / tiny-batch case)
        grid_m = pl.cdiv(N, tm)

        footprint = (2 * tm * dim + 2 * dim * n_pad + 2 * tm * n_pad
                     + 2 * n_pad) * esz
        vmem_limit = min(max(footprint + (4 << 20), 16 << 20), _VMEM_LIMIT_CAP)

        out_padded = pl.pallas_call(
            _linear_kernel_fast,
            out_shape=jax.ShapeDtypeStruct((N, n_pad), out_dtype),
            grid_spec=pltpu.PrefetchScalarGridSpec(
                num_scalar_prefetch=0,
                grid=(grid_m,),
                in_specs=[
                    pl.BlockSpec((tm, dim), lambda i: (i, 0)),       # x stream
                    pl.BlockSpec((dim, n_pad), lambda i: (0, 0)),    # W resident
                    pl.BlockSpec((1, n_pad), lambda i: (0, 0)),      # bias resident
                ],
                out_specs=pl.BlockSpec((tm, n_pad), lambda i: (i, 0)),
            ),
            compiler_params=pltpu.CompilerParams(
                dimension_semantics=("parallel",),
                vmem_limit_bytes=vmem_limit),
            cost_estimate=cost,
        )(x, w_t, b2)
    else:
        # ---------- Fallback: tile the reduction (very large dim / n_way) ----------
        TM = 256
        TK = 128
        for cand in (4096, 2048, 1024, 512, 256, 128):
            need = (2 * TM * cand + 2 * cand * n_pad + 2 * TM * n_pad) * esz \
                   + TM * n_pad * 4
            if need <= _VMEM_BUDGET:
                TK = cand
                break
        K_p = _round_up(dim, TK)
        x_k = x
        if K_p != dim:
            # TODO(synk): in-kernel ragged-K handling would avoid this extra pass over x.
            x_k = jnp.pad(x, ((0, 0), (0, K_p - dim)))
            w_t = jnp.pad(w_t, ((0, K_p - dim), (0, 0)))
        tm = TM if N > TM else N
        grid = (pl.cdiv(N, tm), K_p // TK)

        footprint = (2 * tm * TK + 2 * TK * n_pad + 2 * tm * n_pad
                     + 2 * n_pad) * esz + tm * n_pad * 4
        vmem_limit = min(max(footprint + (4 << 20), 16 << 20), _VMEM_LIMIT_CAP)

        out_padded = pl.pallas_call(
            _linear_kernel_acc,
            out_shape=jax.ShapeDtypeStruct((N, n_pad), out_dtype),
            grid_spec=pltpu.PrefetchScalarGridSpec(
                num_scalar_prefetch=0,
                grid=grid,
                in_specs=[
                    pl.BlockSpec((tm, TK), lambda i, k: (i, k)),
                    pl.BlockSpec((TK, n_pad), lambda i, k: (k, 0)),
                    pl.BlockSpec((1, n_pad), lambda i, k: (0, 0)),
                ],
                out_specs=pl.BlockSpec((tm, n_pad), lambda i, k: (i, 0)),
                scratch_shapes=[pltpu.VMEM((tm, n_pad), jnp.float32)],
            ),
            compiler_params=pltpu.CompilerParams(
                dimension_semantics=("parallel", "arbitrary"),
                vmem_limit_bytes=vmem_limit),
            cost_estimate=cost,
        )(x_k, w_t, b2)

    if n_pad != n_way:
        return out_padded[:, :n_way]
    return out_padded


if __name__ == "__main__":
    # Small shapes consistent with Classifier(dim, n_way).
    N, dim, n_way = 8, 32, 8

    key = jax.random.PRNGKey(0)
    kx, kw, kb = jax.random.split(key, 3)

    # Deterministic init mimicking nn.Linear default: U(-1/sqrt(dim), 1/sqrt(dim))
    bound = 1.0 / (dim ** 0.5)
    x = jax.random.normal(kx, (N, dim), dtype=jnp.float32)
    weight = jax.random.uniform(kw, (n_way, dim), minval=-bound, maxval=bound,
                                dtype=jnp.float32)
    bias = jax.random.uniform(kb, (n_way,), minval=-bound, maxval=bound,
                              dtype=jnp.float32)

    fwd = jax.jit(classifier_forward)
    out = fwd(x, weight, bias)
    jax.block_until_ready(out)

    # Sanity check against plain JAX reference
    ref = x @ weight.T + bias
    assert out.shape == (N, n_way), f"bad shape {out.shape}"
    assert jnp.allclose(out, ref, atol=1e-5, rtol=1e-5), "mismatch vs reference"

    print("KERNEL_OK")
</pallas_src>

<mosaic_0001>
module attributes {stable_mosaic.version = 11 : i64} {
  func.func @_linear_kernel_fast(%arg0: i32, %arg1: memref<8x32xf32, #tpu.memory_space<vmem>>, %arg2: memref<32x128xf32, #tpu.memory_space<vmem>>, %arg3: memref<1x128xf32, #tpu.memory_space<vmem>>, %arg4: memref<8x128xf32, #tpu.memory_space<vmem>>) attributes {dimension_semantics = [#tpu.dimension_semantics<parallel>], iteration_bounds = array<i64: 1>, scalar_prefetch = 0 : i64, scratch_operands = 0 : i64, tpu.core_type = #tpu.core_type<tc>, window_params = [{transform_indices = @transform_0, window_bounds = array<i64: 8, 32>}, {pipeline_mode = #tpu.pipeline_mode<synchronous>, transform_indices = @transform_1, window_bounds = array<i64: 32, 128>}, {pipeline_mode = #tpu.pipeline_mode<synchronous>, transform_indices = @transform_2, window_bounds = array<i64: 1, 128>}, {transform_indices = @transform_3, window_bounds = array<i64: 8, 128>}]} {
    %c0 = arith.constant 0 : index
    %c0_0 = arith.constant 0 : index
    %0 = vector.load %arg1[%c0, %c0_0] : memref<8x32xf32, #tpu.memory_space<vmem>>, vector<8x32xf32>
    %c0_1 = arith.constant 0 : index
    %c0_2 = arith.constant 0 : index
    %1 = vector.load %arg2[%c0_1, %c0_2] : memref<32x128xf32, #tpu.memory_space<vmem>>, vector<32x128xf32>
    %cst = arith.constant dense<0.000000e+00> : vector<8x128xf32>
    %2 = tpu.matmul %0, %1, %cst {dimension_numbers = #tpu.dot_dimension_numbers<[1], [0], [0], [1], [0, 0, 1, 1], [], []>} : vector<8x32xf32>, vector<32x128xf32>, vector<8x128xf32> -> vector<8x128xf32>
    %c0_3 = arith.constant 0 : index
    %c0_4 = arith.constant 0 : index
    %3 = vector.load %arg3[%c0_3, %c0_4] : memref<1x128xf32, #tpu.memory_space<vmem>>, vector<1x128xf32>
    %4 = vector.broadcast %3 : vector<1x128xf32> to vector<8x128xf32>
    %5 = arith.addf %2, %4 : vector<8x128xf32>
    %c0_5 = arith.constant 0 : index
    %c0_6 = arith.constant 0 : index
    %6 = vector.load %arg4[%c0_5, %c0_6] : memref<8x128xf32, #tpu.memory_space<vmem>>, vector<8x128xf32>
    tpu.vector_store %arg4[%c0_5, %c0_6], %5 {strides = array<i32>} : memref<8x128xf32, #tpu.memory_space<vmem>>, vector<8x128xf32>,
    return
  }
  func.func @transform_0(%arg0: i32) -> (i32, i32) {
    %c0_i32 = arith.constant 0 : i32
    %c0_i32_0 = arith.constant 0 : i32
    return %arg0, %c0_i32 : i32, i32
  }
  func.func @transform_1(%arg0: i32) -> (i32, i32) {
    %c0_i32 = arith.constant 0 : i32
    %c0_i32_0 = arith.constant 0 : i32
    %c0_i32_1 = arith.constant 0 : i32
    return %c0_i32, %c0_i32_0 : i32, i32
  }
  func.func @transform_2(%arg0: i32) -> (i32, i32) {
    %c0_i32 = arith.constant 0 : i32
    %c0_i32_0 = arith.constant 0 : i32
    %c0_i32_1 = arith.constant 0 : i32
    return %c0_i32, %c0_i32_0 : i32, i32
  }
  func.func @transform_3(%arg0: i32) -> (i32, i32) {
    %c0_i32 = arith.constant 0 : i32
    %c0_i32_0 = arith.constant 0 : i32
    return %arg0, %c0_i32 : i32, i32
  }
}

</mosaic_0001>

<bundles_post_ra>
// kernel: classifier_forward.1
= control target key start
LH: loop header
LB: loop body
LE: loop exit
PB: predicated region body
PF: predicated region fallthrough
CT: control target
= control target key end

     0   :  { %v159_v1 = vmov 0.0   ;;  %vm160_vm0 = vmmov 0   ;;  %s203_s0 = inlined_call_operand.vmem [shape: f32[8,32], index: 0, kind: input, shape index: {}]   ;;  %s204_s1 = inlined_call_operand.vmem [shape: f32[32,128], index: 1, kind: input, shape index: {}]   ;;  %s205_s2 = inlined_call_operand.vmem [shape: f32[1,128], index: 2, kind: input, shape index: {}]   ;;  %s206_s3 = inlined_call_operand.hbm [shape: f32[8,128], index: 3, kind: output, shape index: {}]  }
   0x1   :  { %v19_v0 = vld [vmem:[%s204_s1 + $0x18] sm:$0xff]  ;;  %123 = vmatprep.subr.mxu0 %v159_v1  ;;  %v18_v2 = vld [vmem:[%s204_s1 + $0x10] sm:$0xff]  ;;  %131 = vmatprep.mubr.msk.f32.mxu0 %vm160_vm0, %v159_v1 }
   0x2   :  { %124 = vmatpush3.msra.mxu0 %v19_v0 }
   0x3   :  { %8 = vsyncpa [#allocation3], 0  ;;  %125 = vmatprep.subr.mxu0 %v159_v1  ;;  %v17_v3 = vld [vmem:[%s204_s1 + $0x8] sm:$0xff]  ;;  %v16_v4 = vld [vmem:[%s204_s1] sm:$0xff]  ;;  %vm27_vm1 = vcmask 261120   ;;  %s161_s24 = smov [#allocation2]  }
   0x4   :  { %126 = vmatpush3.msra.mxu0 %v18_v2  ;;  %v15_v5 = vld [vmem:[%s203_s0] sm:$0xff]  ;;  %s108_s25 = sshll.u32 %s161_s24, 4  ;;  %s109_s25 = int_to_ptr.vmem [resolvable:$true] %s108_s25 }
   0x5   :  { %127 = vmatprep.subr.mxu0 %v159_v1  ;;  %v116_v6 = vld [vmem:[%s205_s2] ss:$0 sm:$0xff]  ;;  %s137_s1 = scalar_lea.vmem %s109_s25, 128  ;;  %p142_p1 = scmp.lt.s32.totalorder %s109_s25, %s109_s25 }
   0x6   :  { %128 = vmatpush3.msra.mxu0 %v17_v3  ;;  %p138_p0 = scmp.ne.s32.totalorder %s109_s25, %s137_s1  ;;  %p143_p2 = scmp.lt.s32.totalorder %s137_s1, %s137_s1 }
   0x7   :  { %129 = vmatprep.subr.mxu0 %v159_v1 }
   0x8   :  { %130 = vmatpush3.msra.mxu0 %v16_v4  ;;  %p144_p3 = por %p143_p2, %p142_p1 }
   0x9   :  { %132 = vmatmul.mubr.msk.f32.vlgmr.msra.gmra.mxu0 %vm27_vm1, %v15_v5 }
   0xa   :  { %p145_p4 = pnand %p144_p3, %p138_p0 }
  0xc9   :  { %v97_v7 = vpop.f32.mrf.mxu0 }
  0xca   :  { %v98_v8 = vadd.f32 %v116_v6, %v97_v7 }
  0xcb   :  { %v133_v9 = vpop.f32.mrf.mxu0 }
  0xcc   :  { %101 = vst [vmem:[#allocation2] sm:$0xff] %v98_v8 }
  0xcd   :  { %148 = shalt.err (!%p145_p4)
}
  0xce   :  { %111 = dma.vmem_to_hbm [thread:$0]  %s109_s25, 128, %s206_s3, [#allocation3]  }
  0xcf   :  { %157 = dma.done.wait [#allocation3], 128  }
  0xd0   :  { %158 = vsyncadd [#allocation3], 4294967168 }
  0xd1   :  { %115 = vsyncpa [#allocation3], 1 }

</bundles_post_ra>
